<compile_context>
chip_gen: v6e
topology: v6e:2x2x1
jax: 0.10.0
libtpu: 0.0.40
codegen_flags: <defaults>
</compile_context>

<pallas_src>
import functools

import jax
import jax.numpy as jnp
from jax.experimental import pallas as pl
from jax.experimental.pallas import tpu as pltpu

LANE = 128                                  # channel dims padded to next multiple of this
TM_MAX = 1024                               # max output-row tile of A
TK_MAX = 2048                               # max reduction tile over A's columns
VMEM_LIMIT_BYTES = 32 * 1024 * 1024         # explicit budget; safe on v5e/v6e/v7x
VMEM_PLAN_BYTES = 24 * 1024 * 1024          # conservative planning budget for residency decisions


def _round_up(x, m):
    return (x + m - 1) // m * m


def _pad2d(x, rows, cols):
    return jnp.pad(x, ((0, rows - x.shape[0]), (0, cols - x.shape[1])))


def _choose_tiles(n):
    """Adaptive (n_pad, tm, tk).

    Small graphs: pad only to 128 lanes, single reduction step, >=2 row tiles (v7x megacore)
    when possible.  Large graphs: 1024x2048 A tiles (>=1 MiB) so per-step overhead is hidden.
    """
    if n <= TK_MAX:
        n_pad = _round_up(n, 128)
        tk = n_pad                                      # single reduction step
        tm = n_pad if n_pad <= 128 else n_pad // 2      # >=2 row tiles when the graph allows
        return n_pad, tm, tk
    n_pad = _round_up(n, TK_MAX)                        # TK_MAX is a multiple of TM_MAX
    return n_pad, TM_MAX, TK_MAX


# ----------------------------- kernels -----------------------------

def xw_kernel(x_ref, w_ref, o_ref):
    """One row tile of XW = X @ W. bf16 inputs, f32 MXU accumulate, bf16 store."""
    o_ref[...] = jnp.dot(
        x_ref[...], w_ref[...], preferred_element_type=jnp.float32
    ).astype(o_ref.dtype)


def _accumulate(a_ref, xw_ref, acc_ref, *, tk, xw_resident):
    k = pl.program_id(1)

    @pl.when(k == 0)
    def _():
        acc_ref[...] = jnp.zeros_like(acc_ref)

    if xw_resident:
        # XW slab is fully VMEM-resident (constant-index block); slice the k-th chunk.
        off = pl.multiple_of(k * tk, tk)
        xw = xw_ref[pl.ds(off, tk), :]
    else:
        xw = xw_ref[...]
    acc_ref[...] += jnp.dot(a_ref[...], xw, preferred_element_type=jnp.float32)


def agg_kernel(a_ref, xw_ref, b_ref, o_ref, acc_ref, *, tk, xw_resident, apply_relu):
    """One (TM, C) tile of H = A @ XW + b (+ReLU), reduction over A columns in TK chunks."""
    _accumulate(a_ref, xw_ref, acc_ref, tk=tk, xw_resident=xw_resident)

    @pl.when(pl.program_id(1) == pl.num_programs(1) - 1)
    def _():
        h = acc_ref[...] + b_ref[...]
        if apply_relu:
            h = jnp.maximum(h, 0.0)
        o_ref[...] = h.astype(o_ref.dtype)


def agg_fused_kernel(a_ref, xw_ref, b_ref, wn_ref, o_ref, acc_ref,
                     *, tk, xw_resident, apply_relu):
    """Same as agg_kernel, but the epilogue also applies the NEXT layer's feature transform:
    emits XW_next = relu(A @ XW + b) @ W_next, avoiding a separate pass + H round-trip."""
    _accumulate(a_ref, xw_ref, acc_ref, tk=tk, xw_resident=xw_resident)

    @pl.when(pl.program_id(1) == pl.num_programs(1) - 1)
    def _():
        h = acc_ref[...] + b_ref[...]
        if apply_relu:
            h = jnp.maximum(h, 0.0)
        o_ref[...] = jnp.dot(
            h.astype(jnp.bfloat16), wn_ref[...], preferred_element_type=jnp.float32
        ).astype(o_ref.dtype)


# ----------------------------- wrappers -----------------------------

def feature_transform(x_bf16, w_bf16, *, tm):
    """XW = X @ W, row-tiled. x:(Npad,Cin) bf16, w:(Cin,Cout) bf16 -> (Npad,Cout) bf16."""
    n_pad, c_in = x_bf16.shape
    c_out = w_bf16.shape[1]
    return pl.pallas_call(
        xw_kernel,
        out_shape=jax.ShapeDtypeStruct((n_pad, c_out), jnp.bfloat16),
        grid=(n_pad // tm,),
        in_specs=[
            pl.BlockSpec((tm, c_in), lambda i: (i, 0)),
            pl.BlockSpec((c_in, c_out), lambda i: (0, 0)),
        ],
        out_specs=pl.BlockSpec((tm, c_out), lambda i: (i, 0)),
        compiler_params=pltpu.CompilerParams(
            dimension_semantics=("parallel",),
            vmem_limit_bytes=VMEM_LIMIT_BYTES,
        ),
    )(x_bf16, w_bf16)


def aggregate(a_bf16, xw_bf16, b_f32, *, apply_relu, out_dtype, tm, tk, w_next=None):
    """H = A @ XW + b (+ReLU) [optionally fused with H @ W_next].

    a:(Npad,Npad) bf16, xw:(Npad,C) bf16, b:(1,C) f32, w_next:(C,Cn) bf16 or None.
    """
    n_pad = a_bf16.shape[0]
    c = xw_bf16.shape[1]
    num_k = n_pad // tk
    c_out = w_next.shape[1] if w_next is not None else c
    out_itemsize = jnp.dtype(out_dtype).itemsize

    # --- XW residency decision (conservatively count 2 pipeline buffers per input) ---
    a_tile_bytes = 2 * tm * tk * 2
    xw_full_bytes = 2 * n_pad * c * 2
    acc_bytes = tm * c * 4
    out_bytes = 2 * tm * c_out * out_itemsize
    misc_bytes = 2 << 20
    xw_resident = (num_k > 1) and (
        a_tile_bytes + xw_full_bytes + acc_bytes + out_bytes + misc_bytes
        <= VMEM_PLAN_BYTES
    )

    if xw_resident:
        # Constant block index -> Pallas DMAs the full XW slab once; kernel slices per k.
        xw_spec = pl.BlockSpec((n_pad, c), lambda i, k: (0, 0))
    else:
        xw_spec = pl.BlockSpec((tk, c), lambda i, k: (k, 0))

    in_specs = [
        pl.BlockSpec((tm, tk), lambda i, k: (i, k)),
        xw_spec,
        pl.BlockSpec((1, c), lambda i, k: (0, 0)),
    ]
    operands = [a_bf16, xw_bf16, b_f32]
    flops = 2 * n_pad * n_pad * c

    if w_next is not None:
        in_specs.append(pl.BlockSpec((c, c_out), lambda i, k: (0, 0)))
        operands.append(w_next)
        kernel = functools.partial(agg_fused_kernel, tk=tk,
                                   xw_resident=xw_resident, apply_relu=apply_relu)
        flops += 2 * n_pad * c * c_out
    else:
        kernel = functools.partial(agg_kernel, tk=tk,
                                   xw_resident=xw_resident, apply_relu=apply_relu)

    cost = pl.CostEstimate(
        flops=flops,
        transcendentals=0,
        bytes_accessed=n_pad * n_pad * 2 + n_pad * c * 2 + n_pad * c_out * out_itemsize,
    )

    return pl.pallas_call(
        kernel,
        out_shape=jax.ShapeDtypeStruct((n_pad, c_out), out_dtype),
        grid=(n_pad // tm, num_k),
        in_specs=in_specs,
        out_specs=pl.BlockSpec((tm, c_out), lambda i, k: (i, 0)),
        scratch_shapes=[pltpu.VMEM((tm, c), jnp.float32)],
        compiler_params=pltpu.CompilerParams(
            dimension_semantics=("parallel", "arbitrary"),
            vmem_limit_bytes=VMEM_LIMIT_BYTES,
        ),
        cost_estimate=cost,
    )(*operands)


# ----------------------------- graph glue -----------------------------

def build_normalized_adjacency(edge_index, num_nodes, n_pad, out_dtype=jnp.bfloat16):
    """Symmetric GCN normalization (torch_geometric gcn_norm semantics: duplicate edges summed,
    add_remaining_self_loops) built directly as a padded `out_dtype` matrix — no f32 NxN
    intermediate is materialized."""
    src, dst = edge_index[0], edge_index[1]
    ones = jnp.ones(src.shape, jnp.float32)
    is_self = (src == dst)

    # in-degree (row = dst) incl. existing self-loops, +1 for nodes lacking a self-loop
    deg = jax.ops.segment_sum(ones, dst, num_segments=num_nodes)
    n_self = jax.ops.segment_sum(jnp.where(is_self, 1.0, 0.0), dst, num_segments=num_nodes)
    needs_self = (n_self == 0).astype(jnp.float32)
    deg = deg + needs_self
    d_inv_sqrt = jnp.where(deg > 0, jax.lax.rsqrt(deg), 0.0)

    # per-edge normalized weights, scattered (duplicates summed) into the padded matrix
    w_edge = (d_inv_sqrt[dst] * d_inv_sqrt[src]).astype(out_dtype)
    a = jnp.zeros((n_pad, n_pad), out_dtype)
    a = a.at[dst, src].add(w_edge)

    idx = jnp.arange(num_nodes)
    w_self = (needs_self * d_inv_sqrt * d_inv_sqrt).astype(out_dtype)
    a = a.at[idx, idx].add(w_self)
    return a


# ----------------------------- model -----------------------------

class GCNEncoderPallas:
    """3-layer GCN encoder; params initialized deterministically (Glorot-style)."""

    def __init__(self, in_channels, hidden_channels, out_channels, key, dropout=0.5):
        self.in_channels = in_channels
        self.hidden_channels = hidden_channels
        self.out_channels = out_channels
        self.dropout = dropout  # inference mode -> identity

        k1, k2, k3 = jax.random.split(key, 3)

        def glorot(k, fan_in, fan_out):
            limit = jnp.sqrt(6.0 / (fan_in + fan_out))
            return jax.random.uniform(k, (fan_in, fan_out), jnp.float32, -limit, limit)

        # f32 master parameters (used by the pure-JAX reference)
        self.w1 = glorot(k1, in_channels, hidden_channels)
        self.b1 = jnp.zeros((1, hidden_channels), jnp.float32)
        self.w2 = glorot(k2, hidden_channels, hidden_channels)
        self.b2 = jnp.zeros((1, hidden_channels), jnp.float32)
        self.w3 = glorot(k3, hidden_channels, out_channels)
        self.b3 = jnp.zeros((1, out_channels), jnp.float32)

        # lane-padded (next multiple of 128, never 256) bf16 weights / f32 biases
        cin_p = _round_up(in_channels, LANE)
        chid_p = _round_up(hidden_channels, LANE)
        cout_p = _round_up(out_channels, LANE)
        self.cin_pad, self.chid_pad, self.cout_pad = cin_p, chid_p, cout_p

        self.w1p = _pad2d(self.w1, cin_p, chid_p).astype(jnp.bfloat16)
        self.b1p = _pad2d(self.b1, 1, chid_p)
        self.w2p = _pad2d(self.w2, chid_p, chid_p).astype(jnp.bfloat16)
        self.b2p = _pad2d(self.b2, 1, chid_p)
        self.w3p = _pad2d(self.w3, chid_p, cout_p).astype(jnp.bfloat16)
        self.b3p = _pad2d(self.b3, 1, cout_p)

    def __call__(self, x, edge_index):
        n = x.shape[0]
        n_pad, tm, tk = _choose_tiles(n)

        a = build_normalized_adjacency(edge_index, n, n_pad)          # padded bf16
        h = _pad2d(x, n_pad, self.cin_pad).astype(jnp.bfloat16)

        # layer 1 feature transform: XW1 = X @ W1
        xw = feature_transform(h, self.w1p, tm=tm)
        # layer 1 aggregation fused with layer 2's feature transform -> XW2
        xw = aggregate(a, xw, self.b1p, apply_relu=True, out_dtype=jnp.bfloat16,
                       tm=tm, tk=tk, w_next=self.w2p)
        # layer 2 aggregation fused with layer 3's feature transform -> XW3
        xw = aggregate(a, xw, self.b2p, apply_relu=True, out_dtype=jnp.bfloat16,
                       tm=tm, tk=tk, w_next=self.w3p)
        # layer 3 aggregation (no relu, no fusion) -> final embeddings, f32
        out = aggregate(a, xw, self.b3p, apply_relu=False, out_dtype=jnp.float32,
                        tm=tm, tk=tk, w_next=None)

        return out[:n, :self.out_channels]


def reference_forward(model, x, edge_index):
    """Pure-JAX reference emulating the same bf16-in / f32-accumulate arithmetic."""
    n = x.shape[0]
    a = build_normalized_adjacency(edge_index, n, n)   # same builder, unpadded

    def layer(h, w, b, relu, out_dtype):
        xw = jnp.dot(h, w.astype(jnp.bfloat16),
                     preferred_element_type=jnp.float32).astype(jnp.bfloat16)
        o = jnp.dot(a, xw, preferred_element_type=jnp.float32) + b
        if relu:
            o = jnp.maximum(o, 0.0)
        return o.astype(out_dtype)

    h = x.astype(jnp.bfloat16)
    h = layer(h, model.w1, model.b1, True, jnp.bfloat16)
    h = layer(h, model.w2, model.b2, True, jnp.bfloat16)
    h = layer(h, model.w3, model.b3, False, jnp.float32)
    return h


if __name__ == "__main__":
    key = jax.random.PRNGKey(0)
    k_x, k_e, k_p = jax.random.split(key, 3)

    num_nodes = 16
    in_channels = 8
    hidden_channels = 32
    out_channels = 16
    num_edges = 40

    x = jax.random.normal(k_x, (num_nodes, in_channels), jnp.float32)
    edge_index = jax.random.randint(k_e, (2, num_edges), 0, num_nodes)

    model = GCNEncoderPallas(in_channels, hidden_channels, out_channels, k_p)

    out = model(x, edge_index)
    out = jax.block_until_ready(out)

    ref = reference_forward(model, x, edge_index)
    assert out.shape == (num_nodes, out_channels)
    assert jnp.allclose(out, ref, atol=1e-2, rtol=1e-2), "mismatch vs reference"

    print("KERNEL_OK")
</pallas_src>

<mosaic_0001>
module attributes {stable_mosaic.version = 11 : i64} {
  func.func @xw_kernel(%arg0: i32, %arg1: memref<128x128xbf16, #tpu.memory_space<vmem>>, %arg2: memref<128x128xbf16, #tpu.memory_space<vmem>>, %arg3: memref<128x128xbf16, #tpu.memory_space<vmem>>) attributes {dimension_semantics = [#tpu.dimension_semantics<parallel>], iteration_bounds = array<i64: 1>, scalar_prefetch = 0 : i64, scratch_operands = 0 : i64, tpu.core_type = #tpu.core_type<tc>, window_params = [{transform_indices = @transform_0, window_bounds = array<i64: 128, 128>}, {pipeline_mode = #tpu.pipeline_mode<synchronous>, transform_indices = @transform_1, window_bounds = array<i64: 128, 128>}, {transform_indices = @transform_2, window_bounds = array<i64: 128, 128>}]} {
    %c0 = arith.constant 0 : index
    %c0_0 = arith.constant 0 : index
    %0 = vector.load %arg1[%c0, %c0_0] : memref<128x128xbf16, #tpu.memory_space<vmem>>, vector<128x128xbf16>
    %c0_1 = arith.constant 0 : index
    %c0_2 = arith.constant 0 : index
    %1 = vector.load %arg2[%c0_1, %c0_2] : memref<128x128xbf16, #tpu.memory_space<vmem>>, vector<128x128xbf16>
    %cst = arith.constant dense<0.000000e+00> : vector<128x128xf32>
    %2 = tpu.matmul %0, %1, %cst {dimension_numbers = #tpu.dot_dimension_numbers<[1], [0], [0], [1], [0, 0, 1, 1], [], []>} : vector<128x128xbf16>, vector<128x128xbf16>, vector<128x128xf32> -> vector<128x128xf32>
    %3 = arith.truncf %2 : vector<128x128xf32> to vector<128x128xbf16>
    %c0_3 = arith.constant 0 : index
    %c0_4 = arith.constant 0 : index
    %4 = vector.load %arg3[%c0_3, %c0_4] : memref<128x128xbf16, #tpu.memory_space<vmem>>, vector<128x128xbf16>
    tpu.vector_store %arg3[%c0_3, %c0_4], %3 {strides = array<i32>} : memref<128x128xbf16, #tpu.memory_space<vmem>>, vector<128x128xbf16>,
    return
  }
  func.func @transform_0(%arg0: i32) -> (i32, i32) {
    %c0_i32 = arith.constant 0 : i32
    %c0_i32_0 = arith.constant 0 : i32
    return %arg0, %c0_i32 : i32, i32
  }
  func.func @transform_1(%arg0: i32) -> (i32, i32) {
    %c0_i32 = arith.constant 0 : i32
    %c0_i32_0 = arith.constant 0 : i32
    %c0_i32_1 = arith.constant 0 : i32
    return %c0_i32, %c0_i32_0 : i32, i32
  }
  func.func @transform_2(%arg0: i32) -> (i32, i32) {
    %c0_i32 = arith.constant 0 : i32
    %c0_i32_0 = arith.constant 0 : i32
    return %arg0, %c0_i32 : i32, i32
  }
}

</mosaic_0001>

<bundles_post_ra>
// kernel: tpu_custom_call.1
= control target key start
LH: loop header
LB: loop body
LE: loop exit
PB: predicated region body
PF: predicated region fallthrough
CT: control target
= control target key end

     0   :  { %7 = vsyncpa [#allocation3], 0  ;;  %s648_s0 = inlined_call_operand.hbm [shape: bf16[128,128], index: 0, kind: input, shape index: {}]   ;;  %s649_s1 = inlined_call_operand.hbm [shape: bf16[128,128], index: 1, kind: input, shape index: {}]   ;;  %s650_s2 = inlined_call_operand.hbm [shape: bf16[128,128], index: 2, kind: output, shape index: {}]  }
   0x1   :  { %8 = vsyncpa [#allocation6], 0 }
   0x2   :  { %9 = vsyncpa [#allocation4], 0  ;;  %s610_s9 = smov [#allocation2]  }
   0x3   :  { %s15_s10 = sshll.u32 %s610_s9, 4  ;;  %s16_s10 = int_to_ptr.vmem [resolvable:$true] %s15_s10 }
   0x4   :  { %s552_s11 = scalar_lea.vmem %s16_s10, 1024  ;;  %p557_p1 = scmp.lt.s32.totalorder %s16_s10, %s16_s10 }
   0x5   :  { %p553_p0 = scmp.ne.s32.totalorder %s16_s10, %s552_s11  ;;  %p558_p2 = scmp.lt.s32.totalorder %s552_s11, %s552_s11 }
   0x7   :  { %p559_p3 = por %p558_p2, %p557_p1 }
   0x9   :  { %p560_p4 = pnand %p559_p3, %p553_p0 }
   0xb   :  { %563 = shalt.err (!%p560_p4)
}
   0xc   :  { %s611_s12 = smov 64   ;;  %s612_s13 = smov 4  }
   0xd   :  { %21 = dma.hbm_to_vmem [thread:$0]  %s648_s0, 1024, %s16_s10, [#allocation3], %s611_s12, %s611_s12, %s612_s13  }
   0xe   :  { %s613_s16 = smov [#allocation5]  }
   0xf   :  { %s27_s17 = sshll.u32 %s613_s16, 4  ;;  %s28_s17 = int_to_ptr.vmem [resolvable:$true] %s27_s17 }
  0x10   :  { %s572_s18 = scalar_lea.vmem %s28_s17, 1024  ;;  %p577_p6 = scmp.lt.s32.totalorder %s28_s17, %s28_s17 }
  0x11   :  { %p573_p5 = scmp.ne.s32.totalorder %s28_s17, %s572_s18  ;;  %p578_p7 = scmp.lt.s32.totalorder %s572_s18, %s572_s18 }
  0x13   :  { %p579_p8 = por %p578_p7, %p577_p6 }
  0x15   :  { %p580_p9 = pnand %p579_p8, %p573_p5 }
  0x17   :  { %583 = shalt.err (!%p580_p9)
}
  0x18   :  { %33 = dma.hbm_to_vmem [thread:$0]  %s649_s1, 1024, %s28_s17, [#allocation6], %s611_s12, %s611_s12, %s612_s13  }
  0x19   :  { %604 = dma.done.wait [#allocation3], 1024  }
  0x1a   :  { %605 = vsyncadd [#allocation3], 4294966272 }
  0x1b   :  { %606 = dma.done.wait [#allocation6], 1024  }
  0x1c   :  { %607 = vsyncadd [#allocation6], 4294966272  ;;  %v528_v0 = vld [vmem:[#allocation5 + $0x38] sm:$0xff]   ;;  %v529_v1 = vld [vmem:[#allocation5 + $0x30] sm:$0xff]   ;;  %s614_s0 = smov [#allocation7]  }
  0x1d   :  { %475 = vmatprep.subr.bf16.mxu0 %v528_v0  ;;  %507 = vmatprep.subr.bf16.mxu1 %v528_v0  ;;  %v530_v2 = vld [vmem:[#allocation5 + $0x28] sm:$0xff]   ;;  %v531_v3 = vld [vmem:[#allocation5 + $0x20] sm:$0xff]   ;;  %v532_v6 = vld [vmem:[#allocation5 + $0x18] sm:$0xff]   ;;  %s351_s1 = sshll.u32 %s614_s0, 4  ;;  %s352_s1 = int_to_ptr.vmem [resolvable:$true] %s351_s1 }
  0x1e   :  { %476 = vmatpush3.bf16.msra.mxu0 %v528_v0  ;;  %515 = vmatpush3.bf16.msra.mxu1 %v528_v0  ;;  %v536_v4 = vld [vmem:[#allocation2] sm:$0xff]   ;;  %v533_v7 = vld [vmem:[#allocation5 + $0x10] sm:$0xff]   ;;  %v534_v8 = vld [vmem:[#allocation5 + $0x8] sm:$0xff]   ;;  %s584_s21 = scalar_lea.vmem %s352_s1, 1024  ;;  %p589_p11 = scmp.lt.s32.totalorder %s352_s1, %s352_s1 }
  0x1f   :  { %477 = vmatprep.subr.bf16.mxu0 %v529_v1  ;;  %508 = vmatprep.subr.bf16.mxu1 %v529_v1  ;;  %v537_v5 = vld [vmem:[#allocation2 + $0x20] sm:$0xff]   ;;  %v538_v10 = vld [vmem:[#allocation2 + $0x8] sm:$0xff]   ;;  %v540_v12 = vld [vmem:[#allocation2 + $0x10] sm:$0xff]   ;;  %p585_p10 = scmp.ne.s32.totalorder %s352_s1, %s584_s21  ;;  %p590_p12 = scmp.lt.s32.totalorder %s584_s21, %s584_s21 }
  0x20   :  { %491 = vmatprep.mubr.bf16.mxu0 %v536_v4  ;;  %499 = vmatprep.mubr.bf16.mxu1 %v537_v5  ;;  %v535_v9 = vld [vmem:[#allocation5] sm:$0xff]   ;;  %v539_v11 = vld [vmem:[#allocation2 + $0x28] sm:$0xff]   ;;  %v541_v13 = vld [vmem:[#allocation2 + $0x30] sm:$0xff]  }
  0x21   :  { %v542_v14 = vld [vmem:[#allocation2 + $0x18] sm:$0xff]   ;;  %p591_p13 = por %p590_p12, %p589_p11 }
  0x22   :  { %478 = vmatpush3.bf16.msra.mxu0 %v529_v1  ;;  %516 = vmatpush3.bf16.msra.mxu1 %v529_v1  ;;  %v543_v15 = vld [vmem:[#allocation2 + $0x38] sm:$0xff]  }
  0x23   :  { %479 = vmatprep.subr.bf16.mxu0 %v530_v2  ;;  %509 = vmatprep.subr.bf16.mxu1 %v530_v2  ;;  %p592_p0 = pnand %p591_p13, %p585_p10 }
  0x26   :  { %480 = vmatpush3.bf16.msra.mxu0 %v530_v2  ;;  %517 = vmatpush3.bf16.msra.mxu1 %v530_v2 }
  0x27   :  { %481 = vmatprep.subr.bf16.mxu0 %v531_v3  ;;  %510 = vmatprep.subr.bf16.mxu1 %v531_v3 }
  0x2a   :  { %482 = vmatpush3.bf16.msra.mxu0 %v531_v3  ;;  %518 = vmatpush3.bf16.msra.mxu1 %v531_v3 }
  0x2b   :  { %483 = vmatprep.subr.bf16.mxu0 %v532_v6  ;;  %511 = vmatprep.subr.bf16.mxu1 %v532_v6 }
  0x2e   :  { %484 = vmatpush3.bf16.msra.mxu0 %v532_v6  ;;  %519 = vmatpush3.bf16.msra.mxu1 %v532_v6 }
  0x2f   :  { %485 = vmatprep.subr.bf16.mxu0 %v533_v7  ;;  %512 = vmatprep.subr.bf16.mxu1 %v533_v7 }
  0x32   :  { %486 = vmatpush3.bf16.msra.mxu0 %v533_v7  ;;  %520 = vmatpush3.bf16.msra.mxu1 %v533_v7 }
  0x33   :  { %487 = vmatprep.subr.bf16.mxu0 %v534_v8  ;;  %513 = vmatprep.subr.bf16.mxu1 %v534_v8 }
  0x36   :  { %488 = vmatpush3.bf16.msra.mxu0 %v534_v8  ;;  %521 = vmatpush3.bf16.msra.mxu1 %v534_v8 }
  0x37   :  { %489 = vmatprep.subr.bf16.mxu0 %v535_v9  ;;  %514 = vmatprep.subr.bf16.mxu1 %v535_v9 }
  0x3a   :  { %490 = vmatpush3.bf16.msra.mxu0 %v535_v9  ;;  %522 = vmatpush3.bf16.msra.mxu1 %v535_v9 }
  0x3d   :  { %492 = vmatmul.mubr.bf16.vlgmr.msra.gmra.mxu0 %v538_v10  ;;  %500 = vmatmul.mubr.bf16.vlgmr.msra.gmra.mxu1 %v539_v11 }
  0x3e   :  { %495 = vmatprep.mubr.bf16.mxu0 %v540_v12  ;;  %503 = vmatprep.mubr.bf16.mxu1 %v541_v13 }
  0x45   :  { %496 = vmatmul.mubr.bf16.gmra.mxu0 %v542_v14  ;;  %504 = vmatmul.mubr.bf16.gmra.mxu1 %v543_v15 }
  0xfd   :  { %v493_v16 = vpop.f32.mrf.mxu0  ;;  %v501_v17 = vpop.f32.mrf.mxu1 }
  0xff   :  { %v203_v18 = vpop.f32.mrf.mxu0  ;;  %v235_v19 = vpop.f32.mrf.mxu1 }
 0x101   :  { %v494_v20 = vpop.f32.mrf.mxu0  ;;  %v502_v21 = vpop.f32.mrf.mxu1 }
 0x102   :  { %v420_v22 = vpack.c.bf16 %v494_v20, %v493_v16  ;;  %v440_v23 = vpack.c.bf16 %v502_v21, %v501_v17 }
 0x103   :  { %v206_v24 = vpop.f32.mrf.mxu0  ;;  %v238_v25 = vpop.f32.mrf.mxu1 }
 0x104   :  { %452 = vst [vmem:[#allocation7 + $0x8] sm:$0xff] %v420_v22   ;;  %456 = vst [vmem:[#allocation7 + $0x28] sm:$0xff] %v440_v23   ;;  %v415_v26 = vpack.c.bf16 %v206_v24, %v203_v18  ;;  %v435_v27 = vpack.c.bf16 %v238_v25, %v235_v19 }
 0x105   :  { %v497_v28 = vpop.f32.mrf.mxu0  ;;  %v505_v29 = vpop.f32.mrf.mxu1 }
 0x106   :  { %416 = vst [vmem:[#allocation7] sm:$0xff] %v415_v26   ;;  %455 = vst [vmem:[#allocation7 + $0x20] sm:$0xff] %v435_v27  }
 0x107   :  { %v219_v30 = vpop.f32.mrf.mxu0  ;;  %v251_v31 = vpop.f32.mrf.mxu1 }
 0x109   :  { %v498_v32 = vpop.f32.mrf.mxu0  ;;  %v506_v33 = vpop.f32.mrf.mxu1 }
 0x10a   :  { %v430_v34 = vpack.c.bf16 %v498_v32, %v497_v28  ;;  %v450_v35 = vpack.c.bf16 %v506_v33, %v505_v29 }
 0x10b   :  { %v222_v36 = vpop.f32.mrf.mxu0  ;;  %v254_v37 = vpop.f32.mrf.mxu1 }
 0x10c   :  { %454 = vst [vmem:[#allocation7 + $0x18] sm:$0xff] %v430_v34   ;;  %458 = vst [vmem:[#allocation7 + $0x38] sm:$0xff] %v450_v35   ;;  %v425_v38 = vpack.c.bf16 %v222_v36, %v219_v30  ;;  %v445_v39 = vpack.c.bf16 %v254_v37, %v251_v31 }
 0x10e   :  { %453 = vst [vmem:[#allocation7 + $0x10] sm:$0xff] %v425_v38   ;;  %457 = vst [vmem:[#allocation7 + $0x30] sm:$0xff] %v445_v39  }
 0x10f   :  { %595 = shalt.err (!%p592_p0)
}
 0x110   :  { %357 = dma.vmem_to_hbm [thread:$0]  %s352_s1, 1024, %s650_s2, [#allocation4], %s611_s12, %s611_s12, %s612_s13  }
 0x111   :  { %608 = dma.done.wait [#allocation4], 1024  }
 0x112   :  { %609 = vsyncadd [#allocation4], 4294966272 }
 0x113   :  { %361 = vsyncpa [#allocation3], 1 }
 0x114   :  { %362 = vsyncpa [#allocation6], 1 }
 0x115   :  { %363 = vsyncpa [#allocation4], 1 }

</bundles_post_ra>
